<compile_context>
chip_gen: v6e
topology: v6e:2x2x1
jax: 0.10.0
libtpu: 0.0.40
codegen_flags: <defaults>
</compile_context>

<pallas_src>
import functools
import math

import jax
import jax.numpy as jnp
from jax.experimental import pallas as pl
from jax.experimental.pallas import tpu as pltpu


# ---------------------------------------------------------------------------
# small helpers
# ---------------------------------------------------------------------------

def _round_up(x, m):
    return ((x + m - 1) // m) * m


# ---------------------------------------------------------------------------
# Pallas kernels
# ---------------------------------------------------------------------------

def _linear_relu_kernel(x_ref, w_ref, b_ref, o_ref, *, apply_relu):
    """o = [relu](x @ w + b).  x:(tm,K) bf16, w:(K,N) bf16, b:(1,N) f32.

    bf16 on the MXU with f32 accumulation; bias/ReLU in f32; stores in
    o_ref.dtype (bf16 for conv activations).
    """
    y = jnp.dot(x_ref[...], w_ref[...], preferred_element_type=jnp.float32)
    y = y + b_ref[...]
    if apply_relu:
        y = jnp.maximum(y, 0.0)
    o_ref[...] = y.astype(o_ref.dtype)


def _fused_fc_kernel(x_ref, w1_ref, b1_ref, w2_ref, b2_ref, o_ref):
    """o = relu(x @ w1 + b1) @ w2 + b2, fully fused (hidden stays in VMEM).

    x:(tm,K1) bf16, w1:(K1,H) bf16, b1:(1,H) f32, w2:(H,N) bf16, b2:(1,N) f32,
    o:(tm,N) f32.  Weights are pre-transposed (in, out); eval passes w_mu/b_mu,
    training passes the wrapper-noised weights.
    """
    h = jnp.dot(x_ref[...], w1_ref[...], preferred_element_type=jnp.float32)
    h = jnp.maximum(h + b1_ref[...], 0.0)
    y = jnp.dot(h.astype(w2_ref.dtype), w2_ref[...],
                preferred_element_type=jnp.float32)
    o_ref[...] = y + b2_ref[...]


# ---------------------------------------------------------------------------
# pallas_call wrappers
# ---------------------------------------------------------------------------

def pallas_matmul_bias(x, w, b, *, apply_relu, out_dtype, tm_max=512):
    """y = [relu](x @ w + b); w in (K, N) layout, b of shape (N,).

    Grid only over M (pl.cdiv partial last block, no padding copies); the
    weight/bias blocks are full-extent and stay VMEM-resident across steps.
    """
    M, K = x.shape
    K2, N = w.shape
    assert K == K2 and b.shape == (N,)
    tm = min(tm_max, _round_up(M, 8))
    grid = (pl.cdiv(M, tm),)
    return pl.pallas_call(
        functools.partial(_linear_relu_kernel, apply_relu=apply_relu),
        out_shape=jax.ShapeDtypeStruct((M, N), out_dtype),
        grid_spec=pltpu.PrefetchScalarGridSpec(
            num_scalar_prefetch=0,
            grid=grid,
            in_specs=[
                pl.BlockSpec((tm, K), lambda i: (i, 0)),
                pl.BlockSpec((K, N), lambda i: (0, 0)),
                pl.BlockSpec((1, N), lambda i: (0, 0)),
            ],
            out_specs=pl.BlockSpec((tm, N), lambda i: (i, 0)),
        ),
        compiler_params=pltpu.CompilerParams(
            dimension_semantics=("parallel",)),
    )(x, w, b.reshape(1, N))


def pallas_fused_fc(x, w1, b1, w2, b2, *, tm_max=256):
    """out = relu(x @ w1 + b1) @ w2 + b2 in a single kernel launch."""
    M, K1 = x.shape
    K1b, H = w1.shape
    Hb, N = w2.shape
    assert K1 == K1b and H == Hb and b1.shape == (H,) and b2.shape == (N,)
    tm = min(tm_max, _round_up(M, 8))
    grid = (pl.cdiv(M, tm),)
    return pl.pallas_call(
        _fused_fc_kernel,
        out_shape=jax.ShapeDtypeStruct((M, N), jnp.float32),
        grid_spec=pltpu.PrefetchScalarGridSpec(
            num_scalar_prefetch=0,
            grid=grid,
            in_specs=[
                pl.BlockSpec((tm, K1), lambda i: (i, 0)),
                pl.BlockSpec((K1, H), lambda i: (0, 0)),
                pl.BlockSpec((1, H), lambda i: (0, 0)),
                pl.BlockSpec((H, N), lambda i: (0, 0)),
                pl.BlockSpec((1, N), lambda i: (0, 0)),
            ],
            out_specs=pl.BlockSpec((tm, N), lambda i: (i, 0)),
        ),
        compiler_params=pltpu.CompilerParams(
            dimension_semantics=("parallel",)),
    )(x, w1, b1.reshape(1, H), w2, b2.reshape(1, N))


def conv2d_relu(x_nhwc, w_mat, b, *, ksize, stride):
    """Conv2d + ReLU via bf16 im2col matmul in a Pallas kernel.

    x_nhwc: (B, H, W, Cin) bf16;  w_mat: (ksize*ksize*Cin, Cout) with rows
    ordered (kh, kw, cin);  b: (Cout,) f32.  Returns (B, OH, OW, Cout) bf16.
    """
    B, H, W, Cin = x_nhwc.shape
    K, S = ksize, stride
    OH = (H - K) // S + 1
    OW = (W - K) // S + 1
    cols = []
    for kh in range(K):
        xr = jax.lax.slice_in_dim(x_nhwc, kh, kh + (OH - 1) * S + 1, S, axis=1)
        for kw in range(K):
            cols.append(
                jax.lax.slice_in_dim(xr, kw, kw + (OW - 1) * S + 1, S, axis=2))
    patches = jnp.stack(cols, axis=3)                    # (B, OH, OW, K*K, Cin) bf16
    patches = patches.reshape(B * OH * OW, K * K * Cin)
    y = pallas_matmul_bias(patches, w_mat.astype(jnp.bfloat16), b,
                           apply_relu=True, out_dtype=jnp.bfloat16)
    return y.reshape(B, OH, OW, w_mat.shape[1])


# ---------------------------------------------------------------------------
# parameter init (matches the PyTorch module; stored in kernel (in, out) layout)
# ---------------------------------------------------------------------------

def init_params(key, obs_shape, hidden_layer, n_actions):
    C, H, W = obs_shape
    ks = jax.random.split(key, 10)

    def conv_params(kw, kb, cin, cout, ksz):
        # nn.Conv2d default: kaiming_uniform_(a=sqrt(5)) -> U(-1/sqrt(fan_in), .)
        fan_in = cin * ksz * ksz
        bound = 1.0 / math.sqrt(fan_in)
        # Stored directly in matmul layout (ksz*ksz*cin, cout); iid uniform so
        # the layout does not change the init distribution.
        w = jax.random.uniform(kw, (ksz * ksz * cin, cout), jnp.float32,
                               minval=-bound, maxval=bound)
        b = jax.random.uniform(kb, (cout,), jnp.float32,
                               minval=-bound, maxval=bound)
        return w, b

    def noisy_params(k1, k2, in_f, out_f):
        # NoisyLinear: kaiming_uniform_(a=sqrt(5)) on w_mu/w_sigma, zeros_ bias.
        bound = 1.0 / math.sqrt(in_f)
        # Stored pre-transposed as (in_f, out_f) so the kernel never transposes.
        w_mu = jax.random.uniform(k1, (in_f, out_f), jnp.float32,
                                  minval=-bound, maxval=bound)
        w_sigma = jax.random.uniform(k2, (in_f, out_f), jnp.float32,
                                     minval=-bound, maxval=bound)
        b_mu = jnp.zeros((out_f,), jnp.float32)
        b_sigma = jnp.zeros((out_f,), jnp.float32)
        return w_mu, w_sigma, b_mu, b_sigma

    oh = (H - 8) // 4 + 1; oh = (oh - 4) // 2 + 1; oh = oh - 3 + 1
    ow = (W - 8) // 4 + 1; ow = (ow - 4) // 2 + 1; ow = ow - 3 + 1
    conv_out_size = 64 * oh * ow

    p = {}
    p["conv1_w"], p["conv1_b"] = conv_params(ks[0], ks[1], C, 32, 8)
    p["conv2_w"], p["conv2_b"] = conv_params(ks[2], ks[3], 32, 64, 4)
    p["conv3_w"], p["conv3_b"] = conv_params(ks[4], ks[5], 64, 64, 3)
    (p["fc1_w_mu"], p["fc1_w_sigma"],
     p["fc1_b_mu"], p["fc1_b_sigma"]) = noisy_params(ks[6], ks[7],
                                                     conv_out_size, hidden_layer)
    (p["fc2_w_mu"], p["fc2_w_sigma"],
     p["fc2_b_mu"], p["fc2_b_sigma"]) = noisy_params(ks[8], ks[9],
                                                     hidden_layer, n_actions)
    return p


# ---------------------------------------------------------------------------
# noisy-weight construction (wrapper side, matches torch.normal(0, sigma, ...))
# ---------------------------------------------------------------------------

def _noisy_weights(key, w_mu, w_sigma, b_mu, b_sigma, sigma):
    kw, kb = jax.random.split(key)
    w_noise = sigma * jax.random.normal(kw, w_mu.shape, jnp.float32)
    b_noise = sigma * jax.random.normal(kb, b_mu.shape, jnp.float32)
    w = (w_mu + w_sigma * w_noise).astype(jnp.bfloat16)   # bf16 into the kernel
    b = b_mu + b_sigma * b_noise                           # bias stays f32
    return w, b


# ---------------------------------------------------------------------------
# full forward pass
# ---------------------------------------------------------------------------

def neural_network_with_cnn_forward(params, x, *, sigma, training, key=None):
    """Forward of NeuralNetworkWithCNN(hidden_layer, obs_shape, n_actions, sigma)."""
    x = x.astype(jnp.float32)                      # match torch .to(float32)
    # NCHW -> NHWC, bf16 for all mem-bound conv traffic (intentional precision
    # trade; accumulation stays f32 in-kernel).
    h = jnp.transpose(x, (0, 2, 3, 1)).astype(jnp.bfloat16)
    h = conv2d_relu(h, params["conv1_w"], params["conv1_b"], ksize=8, stride=4)
    h = conv2d_relu(h, params["conv2_w"], params["conv2_b"], ksize=4, stride=2)
    h = conv2d_relu(h, params["conv3_w"], params["conv3_b"], ksize=3, stride=1)
    B = h.shape[0]
    flat = jnp.transpose(h, (0, 3, 1, 2)).reshape(B, -1)   # torch .view order (C,H,W)

    if training:
        assert key is not None, "training-mode NoisyLinear needs a PRNG key"
        k1, k2 = jax.random.split(key)
        w1, b1 = _noisy_weights(k1, params["fc1_w_mu"], params["fc1_w_sigma"],
                                params["fc1_b_mu"], params["fc1_b_sigma"], sigma)
        w2, b2 = _noisy_weights(k2, params["fc2_w_mu"], params["fc2_w_sigma"],
                                params["fc2_b_mu"], params["fc2_b_sigma"], sigma)
    else:
        # Eval path == F.linear(x, w_mu, b_mu): reads only 1/3 of the weights.
        w1, b1 = params["fc1_w_mu"].astype(jnp.bfloat16), params["fc1_b_mu"]
        w2, b2 = params["fc2_w_mu"].astype(jnp.bfloat16), params["fc2_b_mu"]

    # fc1 (+ReLU) and fc2 fused into one kernel; hidden never touches HBM.
    return pallas_fused_fc(flat, w1, b1, w2, b2)


# ---------------------------------------------------------------------------
# demo
# ---------------------------------------------------------------------------

if __name__ == "__main__":
    key = jax.random.PRNGKey(0)
    k_param, k_x, k_noise = jax.random.split(key, 3)

    obs_shape = (4, 36, 36)      # smallest spatial size the conv stack accepts
    batch, hidden_layer, n_actions, sigma = 2, 128, 6, 0.017

    params = init_params(k_param, obs_shape, hidden_layer, n_actions)
    x = jax.random.normal(k_x, (batch,) + obs_shape, jnp.float32)

    fwd_train = jax.jit(functools.partial(neural_network_with_cnn_forward,
                                          sigma=sigma, training=True))
    fwd_eval = jax.jit(functools.partial(neural_network_with_cnn_forward,
                                         sigma=sigma, training=False))

    y_train = jax.block_until_ready(fwd_train(params, x, key=k_noise))
    y_eval = jax.block_until_ready(fwd_eval(params, x))

    assert y_train.shape == (batch, n_actions)
    assert y_eval.shape == (batch, n_actions)
    assert bool(jnp.isfinite(y_train).all()) and bool(jnp.isfinite(y_eval).all())
    print("KERNEL_OK")
</pallas_src>

<mosaic_0001>
module attributes {stable_mosaic.version = 11 : i64} {
  func.func @_linear_relu_kernel(%arg0: i32, %arg1: memref<128x256xbf16, #tpu.memory_space<vmem>>, %arg2: memref<256x32xbf16, #tpu.memory_space<vmem>>, %arg3: memref<1x32xf32, #tpu.memory_space<vmem>>, %arg4: memref<128x32xbf16, #tpu.memory_space<vmem>>) attributes {dimension_semantics = [#tpu.dimension_semantics<parallel>], iteration_bounds = array<i64: 1>, scalar_prefetch = 0 : i64, scratch_operands = 0 : i64, tpu.core_type = #tpu.core_type<tc>, window_params = [{transform_indices = @transform_0, window_bounds = array<i64: 128, 256>}, {pipeline_mode = #tpu.pipeline_mode<synchronous>, transform_indices = @transform_1, window_bounds = array<i64: 256, 32>}, {pipeline_mode = #tpu.pipeline_mode<synchronous>, transform_indices = @transform_2, window_bounds = array<i64: 1, 32>}, {transform_indices = @transform_3, window_bounds = array<i64: 128, 32>}]} {
    %c0 = arith.constant 0 : index
    %c0_0 = arith.constant 0 : index
    %0 = vector.load %arg1[%c0, %c0_0] : memref<128x256xbf16, #tpu.memory_space<vmem>>, vector<128x256xbf16>
    %c0_1 = arith.constant 0 : index
    %c0_2 = arith.constant 0 : index
    %1 = vector.load %arg2[%c0_1, %c0_2] : memref<256x32xbf16, #tpu.memory_space<vmem>>, vector<256x32xbf16>
    %cst = arith.constant dense<0.000000e+00> : vector<128x32xf32>
    %2 = tpu.matmul %0, %1, %cst {dimension_numbers = #tpu.dot_dimension_numbers<[1], [0], [0], [1], [0, 0, 1, 1], [], []>} : vector<128x256xbf16>, vector<256x32xbf16>, vector<128x32xf32> -> vector<128x32xf32>
    %c0_3 = arith.constant 0 : index
    %c0_4 = arith.constant 0 : index
    %3 = vector.load %arg3[%c0_3, %c0_4] : memref<1x32xf32, #tpu.memory_space<vmem>>, vector<1x32xf32>
    %4 = vector.broadcast %3 : vector<1x32xf32> to vector<128x32xf32>
    %5 = arith.addf %2, %4 : vector<128x32xf32>
    %cst_5 = arith.constant 0.000000e+00 : f32
    %6 = vector.broadcast %cst_5 : f32 to vector<128x32xf32>
    %7 = arith.maximumf %5, %6 : vector<128x32xf32>
    %8 = arith.truncf %7 : vector<128x32xf32> to vector<128x32xbf16>
    %c0_6 = arith.constant 0 : index
    %c0_7 = arith.constant 0 : index
    %9 = vector.load %arg4[%c0_6, %c0_7] : memref<128x32xbf16, #tpu.memory_space<vmem>>, vector<128x32xbf16>
    tpu.vector_store %arg4[%c0_6, %c0_7], %8 {strides = array<i32>} : memref<128x32xbf16, #tpu.memory_space<vmem>>, vector<128x32xbf16>,
    return
  }
  func.func @transform_0(%arg0: i32) -> (i32, i32) {
    %c0_i32 = arith.constant 0 : i32
    %c0_i32_0 = arith.constant 0 : i32
    return %arg0, %c0_i32 : i32, i32
  }
  func.func @transform_1(%arg0: i32) -> (i32, i32) {
    %c0_i32 = arith.constant 0 : i32
    %c0_i32_0 = arith.constant 0 : i32
    %c0_i32_1 = arith.constant 0 : i32
    return %c0_i32, %c0_i32_0 : i32, i32
  }
  func.func @transform_2(%arg0: i32) -> (i32, i32) {
    %c0_i32 = arith.constant 0 : i32
    %c0_i32_0 = arith.constant 0 : i32
    %c0_i32_1 = arith.constant 0 : i32
    return %c0_i32, %c0_i32_0 : i32, i32
  }
  func.func @transform_3(%arg0: i32) -> (i32, i32) {
    %c0_i32 = arith.constant 0 : i32
    %c0_i32_0 = arith.constant 0 : i32
    return %arg0, %c0_i32 : i32, i32
  }
}

module attributes {stable_mosaic.version = 11 : i64} {
  func.func @_linear_relu_kernel(%arg0: i32, %arg1: memref<24x512xbf16, #tpu.memory_space<vmem>>, %arg2: memref<512x64xbf16, #tpu.memory_space<vmem>>, %arg3: memref<1x64xf32, #tpu.memory_space<vmem>>, %arg4: memref<24x64xbf16, #tpu.memory_space<vmem>>) attributes {dimension_semantics = [#tpu.dimension_semantics<parallel>], iteration_bounds = array<i64: 1>, scalar_prefetch = 0 : i64, scratch_operands = 0 : i64, tpu.core_type = #tpu.core_type<tc>, window_params = [{transform_indices = @transform_0, window_bounds = array<i64: 24, 512>}, {pipeline_mode = #tpu.pipeline_mode<synchronous>, transform_indices = @transform_1, window_bounds = array<i64: 512, 64>}, {pipeline_mode = #tpu.pipeline_mode<synchronous>, transform_indices = @transform_2, window_bounds = array<i64: 1, 64>}, {transform_indices = @transform_3, window_bounds = array<i64: 24, 64>}]} {
    %c0 = arith.constant 0 : index
    %c0_0 = arith.constant 0 : index
    %0 = vector.load %arg1[%c0, %c0_0] : memref<24x512xbf16, #tpu.memory_space<vmem>>, vector<24x512xbf16>
    %c0_1 = arith.constant 0 : index
    %c0_2 = arith.constant 0 : index
    %1 = vector.load %arg2[%c0_1, %c0_2] : memref<512x64xbf16, #tpu.memory_space<vmem>>, vector<512x64xbf16>
    %cst = arith.constant dense<0.000000e+00> : vector<24x64xf32>
    %2 = tpu.matmul %0, %1, %cst {dimension_numbers = #tpu.dot_dimension_numbers<[1], [0], [0], [1], [0, 0, 1, 1], [], []>} : vector<24x512xbf16>, vector<512x64xbf16>, vector<24x64xf32> -> vector<24x64xf32>
    %c0_3 = arith.constant 0 : index
    %c0_4 = arith.constant 0 : index
    %3 = vector.load %arg3[%c0_3, %c0_4] : memref<1x64xf32, #tpu.memory_space<vmem>>, vector<1x64xf32>
    %4 = vector.broadcast %3 : vector<1x64xf32> to vector<24x64xf32>
    %5 = arith.addf %2, %4 : vector<24x64xf32>
    %cst_5 = arith.constant 0.000000e+00 : f32
    %6 = vector.broadcast %cst_5 : f32 to vector<24x64xf32>
    %7 = arith.maximumf %5, %6 : vector<24x64xf32>
    %8 = arith.truncf %7 : vector<24x64xf32> to vector<24x64xbf16>
    %c0_6 = arith.constant 0 : index
    %c0_7 = arith.constant 0 : index
    %9 = vector.load %arg4[%c0_6, %c0_7] : memref<24x64xbf16, #tpu.memory_space<vmem>>, vector<24x64xbf16>
    tpu.vector_store %arg4[%c0_6, %c0_7], %8 {strides = array<i32>} : memref<24x64xbf16, #tpu.memory_space<vmem>>, vector<24x64xbf16>,
    return
  }
  func.func @transform_0(%arg0: i32) -> (i32, i32) {
    %c0_i32 = arith.constant 0 : i32
    %c0_i32_0 = arith.constant 0 : i32
    return %arg0, %c0_i32 : i32, i32
  }
  func.func @transform_1(%arg0: i32) -> (i32, i32) {
    %c0_i32 = arith.constant 0 : i32
    %c0_i32_0 = arith.constant 0 : i32
    %c0_i32_1 = arith.constant 0 : i32
    return %c0_i32, %c0_i32_0 : i32, i32
  }
  func.func @transform_2(%arg0: i32) -> (i32, i32) {
    %c0_i32 = arith.constant 0 : i32
    %c0_i32_0 = arith.constant 0 : i32
    %c0_i32_1 = arith.constant 0 : i32
    return %c0_i32, %c0_i32_0 : i32, i32
  }
  func.func @transform_3(%arg0: i32) -> (i32, i32) {
    %c0_i32 = arith.constant 0 : i32
    %c0_i32_0 = arith.constant 0 : i32
    return %arg0, %c0_i32 : i32, i32
  }
}

module attributes {stable_mosaic.version = 11 : i64} {
  func.func @_linear_relu_kernel(%arg0: i32, %arg1: memref<8x576xbf16, #tpu.memory_space<vmem>>, %arg2: memref<576x64xbf16, #tpu.memory_space<vmem>>, %arg3: memref<1x64xf32, #tpu.memory_space<vmem>>, %arg4: memref<8x64xbf16, #tpu.memory_space<vmem>>) attributes {dimension_semantics = [#tpu.dimension_semantics<parallel>], iteration_bounds = array<i64: 1>, scalar_prefetch = 0 : i64, scratch_operands = 0 : i64, tpu.core_type = #tpu.core_type<tc>, window_params = [{transform_indices = @transform_0, window_bounds = array<i64: 8, 576>}, {pipeline_mode = #tpu.pipeline_mode<synchronous>, transform_indices = @transform_1, window_bounds = array<i64: 576, 64>}, {pipeline_mode = #tpu.pipeline_mode<synchronous>, transform_indices = @transform_2, window_bounds = array<i64: 1, 64>}, {transform_indices = @transform_3, window_bounds = array<i64: 8, 64>}]} {
    %c0 = arith.constant 0 : index
    %c0_0 = arith.constant 0 : index
    %0 = vector.load %arg1[%c0, %c0_0] : memref<8x576xbf16, #tpu.memory_space<vmem>>, vector<8x576xbf16>
    %c0_1 = arith.constant 0 : index
    %c0_2 = arith.constant 0 : index
    %1 = vector.load %arg2[%c0_1, %c0_2] : memref<576x64xbf16, #tpu.memory_space<vmem>>, vector<576x64xbf16>
    %cst = arith.constant dense<0.000000e+00> : vector<8x64xf32>
    %2 = tpu.matmul %0, %1, %cst {dimension_numbers = #tpu.dot_dimension_numbers<[1], [0], [0], [1], [0, 0, 1, 1], [], []>} : vector<8x576xbf16>, vector<576x64xbf16>, vector<8x64xf32> -> vector<8x64xf32>
    %c0_3 = arith.constant 0 : index
    %c0_4 = arith.constant 0 : index
    %3 = vector.load %arg3[%c0_3, %c0_4] : memref<1x64xf32, #tpu.memory_space<vmem>>, vector<1x64xf32>
    %4 = vector.broadcast %3 : vector<1x64xf32> to vector<8x64xf32>
    %5 = arith.addf %2, %4 : vector<8x64xf32>
    %cst_5 = arith.constant 0.000000e+00 : f32
    %6 = vector.broadcast %cst_5 : f32 to vector<8x64xf32>
    %7 = arith.maximumf %5, %6 : vector<8x64xf32>
    %8 = arith.truncf %7 : vector<8x64xf32> to vector<8x64xbf16>
    %c0_6 = arith.constant 0 : index
    %c0_7 = arith.constant 0 : index
    %9 = vector.load %arg4[%c0_6, %c0_7] : memref<8x64xbf16, #tpu.memory_space<vmem>>, vector<8x64xbf16>
    tpu.vector_store %arg4[%c0_6, %c0_7], %8 {strides = array<i32>} : memref<8x64xbf16, #tpu.memory_space<vmem>>, vector<8x64xbf16>,
    return
  }
  func.func @transform_0(%arg0: i32) -> (i32, i32) {
    %c0_i32 = arith.constant 0 : i32
    %c0_i32_0 = arith.constant 0 : i32
    return %arg0, %c0_i32 : i32, i32
  }
  func.func @transform_1(%arg0: i32) -> (i32, i32) {
    %c0_i32 = arith.constant 0 : i32
    %c0_i32_0 = arith.constant 0 : i32
    %c0_i32_1 = arith.constant 0 : i32
    return %c0_i32, %c0_i32_0 : i32, i32
  }
  func.func @transform_2(%arg0: i32) -> (i32, i32) {
    %c0_i32 = arith.constant 0 : i32
    %c0_i32_0 = arith.constant 0 : i32
    %c0_i32_1 = arith.constant 0 : i32
    return %c0_i32, %c0_i32_0 : i32, i32
  }
  func.func @transform_3(%arg0: i32) -> (i32, i32) {
    %c0_i32 = arith.constant 0 : i32
    %c0_i32_0 = arith.constant 0 : i32
    return %arg0, %c0_i32 : i32, i32
  }
}

module attributes {stable_mosaic.version = 11 : i64} {
  func.func @_fused_fc_kernel(%arg0: i32, %arg1: memref<8x64xbf16, #tpu.memory_space<vmem>>, %arg2: memref<64x128xbf16, #tpu.memory_space<vmem>>, %arg3: memref<1x128xf32, #tpu.memory_space<vmem>>, %arg4: memref<128x6xbf16, #tpu.memory_space<vmem>>, %arg5: memref<1x6xf32, #tpu.memory_space<vmem>>, %arg6: memref<8x6xf32, #tpu.memory_space<vmem>>) attributes {dimension_semantics = [#tpu.dimension_semantics<parallel>], iteration_bounds = array<i64: 1>, scalar_prefetch = 0 : i64, scratch_operands = 0 : i64, tpu.core_type = #tpu.core_type<tc>, window_params = [{transform_indices = @transform_0, window_bounds = array<i64: 8, 64>}, {pipeline_mode = #tpu.pipeline_mode<synchronous>, transform_indices = @transform_1, window_bounds = array<i64: 64, 128>}, {pipeline_mode = #tpu.pipeline_mode<synchronous>, transform_indices = @transform_2, window_bounds = array<i64: 1, 128>}, {pipeline_mode = #tpu.pipeline_mode<synchronous>, transform_indices = @transform_3, window_bounds = array<i64: 128, 6>}, {pipeline_mode = #tpu.pipeline_mode<synchronous>, transform_indices = @transform_4, window_bounds = array<i64: 1, 6>}, {transform_indices = @transform_5, window_bounds = array<i64: 8, 6>}]} {
    %c0 = arith.constant 0 : index
    %c0_0 = arith.constant 0 : index
    %0 = vector.load %arg1[%c0, %c0_0] : memref<8x64xbf16, #tpu.memory_space<vmem>>, vector<8x64xbf16>
    %c0_1 = arith.constant 0 : index
    %c0_2 = arith.constant 0 : index
    %1 = vector.load %arg2[%c0_1, %c0_2] : memref<64x128xbf16, #tpu.memory_space<vmem>>, vector<64x128xbf16>
    %cst = arith.constant dense<0.000000e+00> : vector<8x128xf32>
    %2 = tpu.matmul %0, %1, %cst {dimension_numbers = #tpu.dot_dimension_numbers<[1], [0], [0], [1], [0, 0, 1, 1], [], []>} : vector<8x64xbf16>, vector<64x128xbf16>, vector<8x128xf32> -> vector<8x128xf32>
    %c0_3 = arith.constant 0 : index
    %c0_4 = arith.constant 0 : index
    %3 = vector.load %arg3[%c0_3, %c0_4] : memref<1x128xf32, #tpu.memory_space<vmem>>, vector<1x128xf32>
    %4 = vector.broadcast %3 : vector<1x128xf32> to vector<8x128xf32>
    %5 = arith.addf %2, %4 : vector<8x128xf32>
    %cst_5 = arith.constant 0.000000e+00 : f32
    %6 = vector.broadcast %cst_5 : f32 to vector<8x128xf32>
    %7 = arith.maximumf %5, %6 : vector<8x128xf32>
    %8 = arith.truncf %7 : vector<8x128xf32> to vector<8x128xbf16>
    %c0_6 = arith.constant 0 : index
    %c0_7 = arith.constant 0 : index
    %9 = vector.load %arg4[%c0_6, %c0_7] : memref<128x6xbf16, #tpu.memory_space<vmem>>, vector<128x6xbf16>
    %cst_8 = arith.constant dense<0.000000e+00> : vector<8x6xf32>
    %10 = tpu.matmul %8, %9, %cst_8 {dimension_numbers = #tpu.dot_dimension_numbers<[1], [0], [0], [1], [0, 0, 1, 1], [], []>} : vector<8x128xbf16>, vector<128x6xbf16>, vector<8x6xf32> -> vector<8x6xf32>
    %c0_9 = arith.constant 0 : index
    %c0_10 = arith.constant 0 : index
    %11 = vector.load %arg5[%c0_9, %c0_10] : memref<1x6xf32, #tpu.memory_space<vmem>>, vector<1x6xf32>
    %12 = vector.broadcast %11 : vector<1x6xf32> to vector<8x6xf32>
    %13 = arith.addf %10, %12 : vector<8x6xf32>
    %c0_11 = arith.constant 0 : index
    %c0_12 = arith.constant 0 : index
    %14 = vector.load %arg6[%c0_11, %c0_12] : memref<8x6xf32, #tpu.memory_space<vmem>>, vector<8x6xf32>
    tpu.vector_store %arg6[%c0_11, %c0_12], %13 {strides = array<i32>} : memref<8x6xf32, #tpu.memory_space<vmem>>, vector<8x6xf32>,
    return
  }
  func.func @transform_0(%arg0: i32) -> (i32, i32) {
    %c0_i32 = arith.constant 0 : i32
    %c0_i32_0 = arith.constant 0 : i32
    return %arg0, %c0_i32 : i32, i32
  }
  func.func @transform_1(%arg0: i32) -> (i32, i32) {
    %c0_i32 = arith.constant 0 : i32
    %c0_i32_0 = arith.constant 0 : i32
    %c0_i32_1 = arith.constant 0 : i32
    return %c0_i32, %c0_i32_0 : i32, i32
  }
  func.func @transform_2(%arg0: i32) -> (i32, i32) {
    %c0_i32 = arith.constant 0 : i32
    %c0_i32_0 = arith.constant 0 : i32
    %c0_i32_1 = arith.constant 0 : i32
    return %c0_i32, %c0_i32_0 : i32, i32
  }
  func.func @transform_3(%arg0: i32) -> (i32, i32) {
    %c0_i32 = arith.constant 0 : i32
    %c0_i32_0 = arith.constant 0 : i32
    %c0_i32_1 = arith.constant 0 : i32
    return %c0_i32, %c0_i32_0 : i32, i32
  }
  func.func @transform_4(%arg0: i32) -> (i32, i32) {
    %c0_i32 = arith.constant 0 : i32
    %c0_i32_0 = arith.constant 0 : i32
    %c0_i32_1 = arith.constant 0 : i32
    return %c0_i32, %c0_i32_0 : i32, i32
  }
  func.func @transform_5(%arg0: i32) -> (i32, i32) {
    %c0_i32 = arith.constant 0 : i32
    %c0_i32_0 = arith.constant 0 : i32
    return %arg0, %c0_i32 : i32, i32
  }
}

</mosaic_0001>

<bundles_post_ra>
// kernel: neural_network_with_cnn_forward.4
= control target key start
LH: loop header
LB: loop body
LE: loop exit
PB: predicated region body
PF: predicated region fallthrough
CT: control target
= control target key end

     0   :  { %vm423_vm0 = vcmask 257024   ;;  %s830_s1 = inlined_call_operand.vmem [shape: bf16[256,32], index: 1, kind: input, shape index: {}]   ;;  %s831_s0 = inlined_call_operand.vmem [shape: bf16[128,256], index: 0, kind: input, shape index: {}]   ;;  %s832_s2 = inlined_call_operand.vmem [shape: f32[1,32], index: 2, kind: input, shape index: {}]   ;;  %s833_s3 = inlined_call_operand.vmem [shape: bf16[128,32], index: 3, kind: output, shape index: {}]  }
   0x1   :  { %v589_v0 = vld [vmem:[%s830_s1 + $0x78] sm:$0xff]   ;;  %v591_v2 = vld [vmem:[%s830_s1 + $0x70] sm:$0xff]   ;;  %v593_v4 = vld [vmem:[%s830_s1 + $0x68] sm:$0xff]  }
   0x2   :  { %v590_v1 = vld [vmem:[%s830_s1 + $0x38] sm:$0xff]   ;;  %509 = vmatprep.subr.bf16.mxu0 %v589_v0  ;;  %573 = vmatprep.subr.bf16.mxu1 %v589_v0  ;;  %v592_v3 = vld [vmem:[%s830_s1 + $0x30] sm:$0xff]   ;;  %v594_v5 = vld [vmem:[%s830_s1 + $0x28] sm:$0xff]  }
   0x3   :  { %510 = vmatpush3.bf16.msra.mxu0 %v590_v1  ;;  %581 = vmatpush3.bf16.msra.mxu1 %v590_v1  ;;  %v595_v6 = vld [vmem:[%s830_s1 + $0x60] sm:$0xff]   ;;  %v597_v8 = vld [vmem:[%s830_s1 + $0x58] sm:$0xff]   ;;  %v599_v10 = vld [vmem:[%s830_s1 + $0x50] sm:$0xff]  }
   0x4   :  { %511 = vmatprep.subr.bf16.mxu0 %v591_v2  ;;  %574 = vmatprep.subr.bf16.mxu1 %v591_v2  ;;  %v596_v7 = vld [vmem:[%s830_s1 + $0x20] sm:$0xff]   ;;  %v598_v9 = vld [vmem:[%s830_s1 + $0x18] sm:$0xff]   ;;  %v600_v13 = vld [vmem:[%s830_s1 + $0x10] sm:$0xff]  }
   0x5   :  { %v607_v11 = vld [vmem:[%s831_s0 + $0x4] ss:$8 sps:$4 sm:$0xff]   ;;  %v605_v18 = vld [vmem:[%s831_s0] ss:$8 sps:$4 sm:$0xff]   ;;  %v611_v20 = vld [vmem:[%s831_s0 + $0x14] ss:$8 sps:$4 sm:$0xff]  }
   0x6   :  { %v610_v12 = vld [vmem:[%s831_s0 + $0x44] ss:$8 sps:$4 sm:$0xff]   ;;  %278 = vmatprep.mubr.bf16.mxu0 %v607_v11  ;;  %v608_v19 = vld [vmem:[%s831_s0 + $0x40] ss:$8 sps:$4 sm:$0xff]   ;;  %v613_v21 = vld [vmem:[%s831_s0 + $0x54] ss:$8 sps:$4 sm:$0xff]  }
   0x7   :  { %512 = vmatpush3.bf16.msra.mxu0 %v592_v3  ;;  %582 = vmatpush3.bf16.msra.mxu1 %v592_v3  ;;  %v601_v14 = vld [vmem:[%s830_s1 + $0x48] sm:$0xff]   ;;  %v603_v16 = vld [vmem:[%s830_s1 + $0x40] sm:$0xff]   ;;  %v615_v22 = vld [vmem:[%s831_s0 + $0x10] ss:$8 sps:$4 sm:$0xff]  }
   0x8   :  { %513 = vmatprep.subr.bf16.mxu0 %v593_v4  ;;  %575 = vmatprep.subr.bf16.mxu1 %v593_v4  ;;  %v602_v15 = vld [vmem:[%s830_s1 + $0x8] sm:$0xff]   ;;  %v604_v17 = vld [vmem:[%s830_s1] sm:$0xff]   ;;  %v616_v23 = vld [vmem:[%s831_s0 + $0x50] ss:$8 sps:$4 sm:$0xff]  }
   0x9   :  { %310 = vmatprep.mubr.bf16.mxu1 %v610_v12  ;;  %v617_v24 = vld [vmem:[%s831_s0 + $0x24] ss:$8 sps:$4 sm:$0xff]   ;;  %v621_v26 = vld [vmem:[%s831_s0 + $0x20] ss:$8 sps:$4 sm:$0xff]   ;;  %v623_v28 = vld [vmem:[%s831_s0 + $0x34] ss:$8 sps:$4 sm:$0xff]  }
   0xa   :  { %v619_v25 = vld [vmem:[%s831_s0 + $0x64] ss:$8 sps:$4 sm:$0xff]   ;;  %v622_v27 = vld [vmem:[%s831_s0 + $0x60] ss:$8 sps:$4 sm:$0xff]   ;;  %v625_v29 = vld [vmem:[%s831_s0 + $0x74] ss:$8 sps:$4 sm:$0xff]  }
   0xb   :  { %514 = vmatpush3.bf16.msra.mxu0 %v594_v5  ;;  %583 = vmatpush3.bf16.msra.mxu1 %v594_v5  ;;  %v627_v30 = vld [vmem:[%s831_s0 + $0x30] ss:$8 sps:$4 sm:$0xff]   ;;  %v748_v34 = vld [vmem:[%s832_s2] ss:$0 sm:$0xff] }
   0xc   :  { %515 = vmatprep.subr.bf16.mxu0 %v595_v6  ;;  %576 = vmatprep.subr.bf16.mxu1 %v595_v6  ;;  %v628_v31 = vld [vmem:[%s831_s0 + $0x70] ss:$8 sps:$4 sm:$0xff]  }
   0xf   :  { %516 = vmatpush3.bf16.msra.mxu0 %v596_v7  ;;  %584 = vmatpush3.bf16.msra.mxu1 %v596_v7 }
  0x10   :  { %517 = vmatprep.subr.bf16.mxu0 %v597_v8  ;;  %577 = vmatprep.subr.bf16.mxu1 %v597_v8 }
  0x13   :  { %518 = vmatpush3.bf16.msra.mxu0 %v598_v9  ;;  %585 = vmatpush3.bf16.msra.mxu1 %v598_v9 }
  0x14   :  { %519 = vmatprep.subr.bf16.mxu0 %v599_v10  ;;  %578 = vmatprep.subr.bf16.mxu1 %v599_v10 }
  0x17   :  { %520 = vmatpush3.bf16.msra.mxu0 %v600_v13  ;;  %586 = vmatpush3.bf16.msra.mxu1 %v600_v13 }
  0x18   :  { %521 = vmatprep.subr.bf16.mxu0 %v601_v14  ;;  %579 = vmatprep.subr.bf16.mxu1 %v601_v14 }
  0x1b   :  { %522 = vmatpush3.bf16.msra.mxu0 %v602_v15  ;;  %587 = vmatpush3.bf16.msra.mxu1 %v602_v15 }
  0x1c   :  { %523 = vmatprep.subr.bf16.mxu0 %v603_v16  ;;  %580 = vmatprep.subr.bf16.mxu1 %v603_v16 }
  0x1f   :  { %524 = vmatpush3.bf16.msra.mxu0 %v604_v17  ;;  %588 = vmatpush3.bf16.msra.mxu1 %v604_v17 }
  0x22   :  { %279 = vmatmul.mubr.bf16.vlgmr.msra.gmra.mxu0 %v605_v18  ;;  %311 = vmatmul.mubr.bf16.vlgmr.msra.gmra.mxu1 %v608_v19 }
  0x23   :  { %286 = vmatprep.mubr.bf16.mxu0 %v611_v20  ;;  %318 = vmatprep.mubr.bf16.mxu1 %v613_v21 }
  0x2a   :  { %287 = vmatmul.mubr.bf16.gmra.mxu0 %v615_v22  ;;  %319 = vmatmul.mubr.bf16.gmra.mxu1 %v616_v23 }
  0x2b   :  { %294 = vmatprep.mubr.bf16.mxu0 %v617_v24  ;;  %326 = vmatprep.mubr.bf16.mxu1 %v619_v25 }
  0x32   :  { %295 = vmatmul.mubr.bf16.gmra.mxu0 %v621_v26  ;;  %327 = vmatmul.mubr.bf16.gmra.mxu1 %v622_v27 }
  0x33   :  { %302 = vmatprep.mubr.bf16.mxu0 %v623_v28  ;;  %334 = vmatprep.mubr.bf16.mxu1 %v625_v29 }
  0x3a   :  { %303 = vmatmul.mubr.bf16.gmra.mxu0 %v627_v30  ;;  %335 = vmatmul.mubr.bf16.gmra.mxu1 %v628_v31 }
  0xe2   :  { %v525_v32 = vpop.f32.mrf.mxu0  ;;  %v549_v33 = vpop.f32.mrf.mxu1 }
  0xe4   :  { %v526_v35 = vpop.f32.mrf.mxu0  ;;  %v550_v36 = vpop.f32.mrf.mxu1 }
  0xe5   :  { %v527_v37 = vadd.f32 %v526_v35, %v525_v32  ;;  %v551_v38 = vadd.f32 %v550_v36, %v549_v33 }
  0xe6   :  { %v528_v39 = vpop.f32.mrf.mxu0  ;;  %v552_v40 = vpop.f32.mrf.mxu1 }
  0xe7   :  { %v281_v41 = vadd.f32 %v527_v37, %v748_v34  ;;  %v313_v42 = vadd.f32 %v551_v38, %v748_v34 }
  0xe8   :  { %v529_v43 = vpop.f32.mrf.mxu0  ;;  %v553_v44 = vpop.f32.mrf.mxu1 }
  0xe9   :  { %v343_v45 = vmax.f32 %v281_v41, 0.0  ;;  %v351_v46 = vmax.f32 %v313_v42, 0.0  ;;  %v530_v47 = vadd.f32 %v529_v43, %v528_v39  ;;  %v554_v48 = vadd.f32 %v553_v44, %v552_v40 }
  0xea   :  { %v531_v49 = vpop.f32.mrf.mxu0  ;;  %v555_v50 = vpop.f32.mrf.mxu1 }
  0xeb   :  { %v493_v51 = vpack.c.bf16 %v343_v45, %v343_v45  ;;  %v501_v52 = vpack.c.bf16 %v351_v46, %v351_v46  ;;  %v284_v53 = vadd.f32 %v530_v47, %v748_v34  ;;  %v316_v54 = vadd.f32 %v554_v48, %v748_v34 }
  0xec   :  { %v532_v55 = vpop.f32.mrf.mxu0  ;;  %v556_v56 = vpop.f32.mrf.mxu1 }
  0xed   :  { %424 = vst.msk [vmem:[%s833_s3] sm:$0xf] %vm423_vm0, %v493_v51  ;;  %432 = vst.msk [vmem:[%s833_s3 + $0x20] sm:$0xf] %vm423_vm0, %v501_v52  ;;  %v344_v57 = vmax.f32 %v284_v53, 0.0  ;;  %v352_v58 = vmax.f32 %v316_v54, 0.0  ;;  %v533_v59 = vadd.f32 %v532_v55, %v531_v49  ;;  %v557_v60 = vadd.f32 %v556_v56, %v555_v50 }
  0xee   :  { %v534_v61 = vpop.f32.mrf.mxu0  ;;  %v558_v62 = vpop.f32.mrf.mxu1 }
  0xef   :  { %v494_v63 = vpack.c.bf16 %v344_v57, %v344_v57  ;;  %v502_v0 = vpack.c.bf16 %v352_v58, %v352_v58  ;;  %v289_v1 = vadd.f32 %v533_v59, %v748_v34  ;;  %v321_v2 = vadd.f32 %v557_v60, %v748_v34 }
  0xf0   :  { %v535_v3 = vpop.f32.mrf.mxu0  ;;  %v559_v4 = vpop.f32.mrf.mxu1 }
  0xf1   :  { %425 = vst.msk [vmem:[%s833_s3 + $0x4] sm:$0xf] %vm423_vm0, %v494_v63  ;;  %433 = vst.msk [vmem:[%s833_s3 + $0x24] sm:$0xf] %vm423_vm0, %v502_v0  ;;  %v345_v5 = vmax.f32 %v289_v1, 0.0  ;;  %v353_v6 = vmax.f32 %v321_v2, 0.0  ;;  %v536_v7 = vadd.f32 %v535_v3, %v534_v61  ;;  %v560_v8 = vadd.f32 %v559_v4, %v558_v62 }
  0xf2   :  { %v537_v9 = vpop.f32.mrf.mxu0  ;;  %v561_v10 = vpop.f32.mrf.mxu1 }
  0xf3   :  { %v495_v11 = vpack.c.bf16 %v345_v5, %v345_v5  ;;  %v503_v12 = vpack.c.bf16 %v353_v6, %v353_v6  ;;  %v292_v13 = vadd.f32 %v536_v7, %v748_v34  ;;  %v324_v14 = vadd.f32 %v560_v8, %v748_v34 }
  0xf4   :  { %v538_v15 = vpop.f32.mrf.mxu0  ;;  %v562_v16 = vpop.f32.mrf.mxu1 }
  0xf5   :  { %426 = vst.msk [vmem:[%s833_s3 + $0x8] sm:$0xf] %vm423_vm0, %v495_v11  ;;  %434 = vst.msk [vmem:[%s833_s3 + $0x28] sm:$0xf] %vm423_vm0, %v503_v12  ;;  %v346_v17 = vmax.f32 %v292_v13, 0.0  ;;  %v354_v18 = vmax.f32 %v324_v14, 0.0  ;;  %v539_v19 = vadd.f32 %v538_v15, %v537_v9  ;;  %v563_v20 = vadd.f32 %v562_v16, %v561_v10 }
  0xf6   :  { %v540_v21 = vpop.f32.mrf.mxu0  ;;  %v564_v22 = vpop.f32.mrf.mxu1 }
  0xf7   :  { %v496_v23 = vpack.c.bf16 %v346_v17, %v346_v17  ;;  %v504_v24 = vpack.c.bf16 %v354_v18, %v354_v18  ;;  %v297_v25 = vadd.f32 %v539_v19, %v748_v34  ;;  %v329_v26 = vadd.f32 %v563_v20, %v748_v34 }
  0xf8   :  { %v541_v27 = vpop.f32.mrf.mxu0  ;;  %v565_v28 = vpop.f32.mrf.mxu1 }
  0xf9   :  { %427 = vst.msk [vmem:[%s833_s3 + $0xc] sm:$0xf] %vm423_vm0, %v496_v23  ;;  %435 = vst.msk [vmem:[%s833_s3 + $0x2c] sm:$0xf] %vm423_vm0, %v504_v24  ;;  %v347_v29 = vmax.f32 %v297_v25, 0.0  ;;  %v355_v30 = vmax.f32 %v329_v26, 0.0  ;;  %v542_v31 = vadd.f32 %v541_v27, %v540_v21  ;;  %v566_v32 = vadd.f32 %v565_v28, %v564_v22 }
  0xfa   :  { %v543_v33 = vpop.f32.mrf.mxu0  ;;  %v567_v35 = vpop.f32.mrf.mxu1 }
  0xfb   :  { %v497_v36 = vpack.c.bf16 %v347_v29, %v347_v29  ;;  %v505_v37 = vpack.c.bf16 %v355_v30, %v355_v30  ;;  %v300_v38 = vadd.f32 %v542_v31, %v748_v34  ;;  %v332_v39 = vadd.f32 %v566_v32, %v748_v34 }
  0xfc   :  { %v544_v40 = vpop.f32.mrf.mxu0  ;;  %v568_v41 = vpop.f32.mrf.mxu1 }
  0xfd   :  { %428 = vst.msk [vmem:[%s833_s3 + $0x10] sm:$0xf] %vm423_vm0, %v497_v36  ;;  %436 = vst.msk [vmem:[%s833_s3 + $0x30] sm:$0xf] %vm423_vm0, %v505_v37  ;;  %v348_v42 = vmax.f32 %v300_v38, 0.0  ;;  %v356_v43 = vmax.f32 %v332_v39, 0.0  ;;  %v545_v44 = vadd.f32 %v544_v40, %v543_v33  ;;  %v569_v45 = vadd.f32 %v568_v41, %v567_v35 }
  0xfe   :  { %v546_v46 = vpop.f32.mrf.mxu0  ;;  %v570_v47 = vpop.f32.mrf.mxu1 }
  0xff   :  { %v498_v48 = vpack.c.bf16 %v348_v42, %v348_v42  ;;  %v506_v49 = vpack.c.bf16 %v356_v43, %v356_v43  ;;  %v305_v50 = vadd.f32 %v545_v44, %v748_v34  ;;  %v337_v51 = vadd.f32 %v569_v45, %v748_v34 }
 0x100   :  { %v547_v52 = vpop.f32.mrf.mxu0  ;;  %v571_v53 = vpop.f32.mrf.mxu1 }
 0x101   :  { %429 = vst.msk [vmem:[%s833_s3 + $0x14] sm:$0xf] %vm423_vm0, %v498_v48  ;;  %437 = vst.msk [vmem:[%s833_s3 + $0x34] sm:$0xf] %vm423_vm0, %v506_v49  ;;  %v349_v54 = vmax.f32 %v305_v50, 0.0  ;;  %v357_v55 = vmax.f32 %v337_v51, 0.0  ;;  %v548_v56 = vadd.f32 %v547_v52, %v546_v46  ;;  %v572_v57 = vadd.f32 %v571_v53, %v570_v47 }
 0x103   :  { %v499_v58 = vpack.c.bf16 %v349_v54, %v349_v54  ;;  %v507_v59 = vpack.c.bf16 %v357_v55, %v357_v55  ;;  %v308_v60 = vadd.f32 %v548_v56, %v748_v34  ;;  %v340_v61 = vadd.f32 %v572_v57, %v748_v34 }
 0x105   :  { %430 = vst.msk [vmem:[%s833_s3 + $0x18] sm:$0xf] %vm423_vm0, %v499_v58  ;;  %438 = vst.msk [vmem:[%s833_s3 + $0x38] sm:$0xf] %vm423_vm0, %v507_v59  ;;  %v350_v62 = vmax.f32 %v308_v60, 0.0  ;;  %v358_v63 = vmax.f32 %v340_v61, 0.0 }
 0x107   :  { %v500_v0 = vpack.c.bf16 %v350_v62, %v350_v62  ;;  %v508_v1 = vpack.c.bf16 %v358_v63, %v358_v63 }
 0x109   :  { %431 = vst.msk [vmem:[%s833_s3 + $0x1c] sm:$0xf] %vm423_vm0, %v500_v0  ;;  %439 = vst.msk [vmem:[%s833_s3 + $0x3c] sm:$0xf] %vm423_vm0, %v508_v1 }

// kernel: neural_network_with_cnn_forward.5
= control target key start
LH: loop header
LB: loop body
LE: loop exit
PB: predicated region body
PF: predicated region fallthrough
CT: control target
= control target key end

     0   :  { %vm430_vm0 = vcmask 519168   ;;  %s732_s1 = inlined_call_operand.vmem [shape: bf16[512,64], index: 1, kind: input, shape index: {}]   ;;  %s733_s0 = inlined_call_operand.vmem [shape: bf16[18,512], index: 0, kind: input, shape index: {}]   ;;  %s734_s2 = inlined_call_operand.vmem [shape: f32[1,64], index: 2, kind: input, shape index: {}]   ;;  %s735_s3 = inlined_call_operand.vmem [shape: bf16[18,64], index: 3, kind: output, shape index: {}]  }
   0x1   :  { %v541_v0 = vld [vmem:[%s732_s1 + $0x78] sm:$0xff]   ;;  %v545_v4 = vld [vmem:[%s732_s1 + $0x70] sm:$0xff]   ;;  %v549_v8 = vld [vmem:[%s732_s1 + $0x68] sm:$0xff]  }
   0x2   :  { %v542_v1 = vld [vmem:[%s732_s1 + $0xf8] sm:$0xff]   ;;  %485 = vmatprep.subr.bf16.mxu0 %v541_v0  ;;  %v546_v5 = vld [vmem:[%s732_s1 + $0xf0] sm:$0xff]   ;;  %v550_v9 = vld [vmem:[%s732_s1 + $0xe8] sm:$0xff]  }
   0x3   :  { %v543_v2 = vld [vmem:[%s732_s1 + $0x38] sm:$0xff]   ;;  %513 = vmatprep.subr.bf16.mxu1 %v542_v1  ;;  %v547_v6 = vld [vmem:[%s732_s1 + $0x30] sm:$0xff]   ;;  %v551_v10 = vld [vmem:[%s732_s1 + $0x28] sm:$0xff]  }
   0x4   :  { %v544_v3 = vld [vmem:[%s732_s1 + $0xb8] sm:$0xff]   ;;  %486 = vmatpush3.bf16.msra.mxu0 %v543_v2  ;;  %v548_v7 = vld [vmem:[%s732_s1 + $0xb0] sm:$0xff]   ;;  %v552_v11 = vld [vmem:[%s732_s1 + $0xa8] sm:$0xff]  }
   0x5   :  { %514 = vmatpush3.bf16.msra.mxu1 %v544_v3  ;;  %487 = vmatprep.subr.bf16.mxu0 %v545_v4  ;;  %v553_v12 = vld [vmem:[%s732_s1 + $0x60] sm:$0xff]   ;;  %v557_v16 = vld [vmem:[%s732_s1 + $0x58] sm:$0xff]   ;;  %v561_v20 = vld [vmem:[%s732_s1 + $0x50] sm:$0xff]  }
   0x6   :  { %515 = vmatprep.subr.bf16.mxu1 %v546_v5  ;;  %v554_v13 = vld [vmem:[%s732_s1 + $0xe0] sm:$0xff]   ;;  %v558_v17 = vld [vmem:[%s732_s1 + $0xd8] sm:$0xff]   ;;  %v562_v21 = vld [vmem:[%s732_s1 + $0xd0] sm:$0xff]  }
   0x7   :  { %v555_v14 = vld [vmem:[%s732_s1 + $0x20] sm:$0xff]   ;;  %v559_v18 = vld [vmem:[%s732_s1 + $0x18] sm:$0xff]   ;;  %v563_v22 = vld [vmem:[%s732_s1 + $0x10] sm:$0xff]  }
   0x8   :  { %488 = vmatpush3.bf16.msra.mxu0 %v547_v6  ;;  %v556_v15 = vld [vmem:[%s732_s1 + $0xa0] sm:$0xff]   ;;  %v560_v19 = vld [vmem:[%s732_s1 + $0x98] sm:$0xff]   ;;  %v564_v23 = vld [vmem:[%s732_s1 + $0x90] sm:$0xff]  }
   0x9   :  { %516 = vmatpush3.bf16.msra.mxu1 %v548_v7  ;;  %489 = vmatprep.subr.bf16.mxu0 %v549_v8  ;;  %v565_v24 = vld [vmem:[%s732_s1 + $0x48] sm:$0xff]   ;;  %v569_v28 = vld [vmem:[%s732_s1 + $0x40] sm:$0xff]  }
   0xa   :  { %517 = vmatprep.subr.bf16.mxu1 %v550_v9  ;;  %v566_v25 = vld [vmem:[%s732_s1 + $0xc8] sm:$0xff]   ;;  %v570_v29 = vld [vmem:[%s732_s1 + $0xc0] sm:$0xff]  }
   0xb   :  { %v567_v26 = vld [vmem:[%s732_s1 + $0x8] sm:$0xff]   ;;  %v571_v30 = vld [vmem:[%s732_s1] sm:$0xff]  }
   0xc   :  { %490 = vmatpush3.bf16.msra.mxu0 %v551_v10  ;;  %v568_v27 = vld [vmem:[%s732_s1 + $0x88] sm:$0xff]   ;;  %v572_v31 = vld [vmem:[%s732_s1 + $0x80] sm:$0xff]  }
   0xd   :  { %518 = vmatpush3.bf16.msra.mxu1 %v552_v11  ;;  %491 = vmatprep.subr.bf16.mxu0 %v553_v12  ;;  %v573_v32 = vld [vmem:[%s733_s0] ss:$16 sps:$4 sm:$0xff]   ;;  %v575_v33 = vld [vmem:[%s733_s0 + $0x4] ss:$16 sps:$4 sm:$0xff]   ;;  %v576_v34 = vld [vmem:[%s733_s0 + $0x8] ss:$16 sps:$4 sm:$0xff]  }
   0xe   :  { %519 = vmatprep.subr.bf16.mxu1 %v554_v13  ;;  %v578_v35 = vld [vmem:[%s733_s0 + $0xc] ss:$16 sps:$4 sm:$0xff]   ;;  %v19_v36 = vld [vmem:[%s733_s0 + $0x20] sm:$0xff]  ;;  %350 = vmatprep.mubr.bf16.mxu0 %v575_v33 }
   0xf   :  { %v444_v37 = vcombine.high %v19_v36, %v19_v36  ;;  %v20_v38 = vld [vmem:[%s733_s0 + $0x28] sm:$0xff]  ;;  %398 = vmatprep.mubr.bf16.mxu1 %v578_v35  ;;  %v443_v40 = vcombine.low %v19_v36, %v19_v36  ;;  %v438_v44 = vld [vmem:[%s734_s2] ss:$0 sm:$0xff] }
  0x10   :  { %492 = vmatpush3.bf16.msra.mxu0 %v555_v14  ;;  %v446_v39 = vcombine.high %v20_v38, %v20_v38  ;;  %v445_v41 = vcombine.low %v20_v38, %v20_v38 }
  0x11   :  { %520 = vmatpush3.bf16.msra.mxu1 %v556_v15  ;;  %493 = vmatprep.subr.bf16.mxu0 %v557_v16 }
  0x12   :  { %521 = vmatprep.subr.bf16.mxu1 %v558_v17 }
  0x14   :  { %494 = vmatpush3.bf16.msra.mxu0 %v559_v18 }
  0x15   :  { %522 = vmatpush3.bf16.msra.mxu1 %v560_v19  ;;  %495 = vmatprep.subr.bf16.mxu0 %v561_v20 }
  0x16   :  { %523 = vmatprep.subr.bf16.mxu1 %v562_v21 }
  0x18   :  { %496 = vmatpush3.bf16.msra.mxu0 %v563_v22 }
  0x19   :  { %524 = vmatpush3.bf16.msra.mxu1 %v564_v23  ;;  %497 = vmatprep.subr.bf16.mxu0 %v565_v24 }
  0x1a   :  { %525 = vmatprep.subr.bf16.mxu1 %v566_v25 }
  0x1c   :  { %498 = vmatpush3.bf16.msra.mxu0 %v567_v26 }
  0x1d   :  { %526 = vmatpush3.bf16.msra.mxu1 %v568_v27  ;;  %499 = vmatprep.subr.bf16.mxu0 %v569_v28 }
  0x1e   :  { %527 = vmatprep.subr.bf16.mxu1 %v570_v29 }
  0x20   :  { %500 = vmatpush3.bf16.msra.mxu0 %v571_v30 }
  0x21   :  { %528 = vmatpush3.bf16.msra.mxu1 %v572_v31 }
  0x23   :  { %351 = vmatmul.mubr.bf16.vlgmr.msra.gmra.mxu0 %v573_v32 }
  0x24   :  { %399 = vmatmul.mubr.bf16.vlgmr.msra.gmra.mxu1 %v576_v34  ;;  %358 = vmatprep.mubr.bf16.mxu0 %v444_v37 }
  0x25   :  { %406 = vmatprep.mubr.bf16.mxu1 %v446_v39 }
  0x2b   :  { %359 = vmatmul.mubr.bf16.gmra.mxu0 %v443_v40 }
  0x2c   :  { %407 = vmatmul.mubr.bf16.gmra.mxu1 %v445_v41 }
  0xe3   :  { %v501_v42 = vpop.f32.mrf.mxu0 }
  0xe4   :  { %v529_v43 = vpop.f32.mrf.mxu1 }
  0xe5   :  { %v502_v45 = vpop.f32.mrf.mxu0 }
  0xe6   :  { %v503_v46 = vadd.f32 %v502_v45, %v501_v42  ;;  %v530_v47 = vpop.f32.mrf.mxu1 }
  0xe7   :  { %v504_v48 = vpop.f32.mrf.mxu0  ;;  %v531_v50 = vadd.f32 %v530_v47, %v529_v43 }
  0xe8   :  { %v353_v49 = vadd.f32 %v503_v46, %v438_v44  ;;  %v532_v51 = vpop.f32.mrf.mxu1 }
  0xe9   :  { %v505_v52 = vpop.f32.mrf.mxu0 }
  0xea   :  { %v401_v53 = vadd.f32 %v531_v50, %v353_v49  ;;  %v506_v54 = vadd.f32 %v505_v52, %v504_v48  ;;  %v533_v55 = vpop.f32.mrf.mxu1 }
  0xeb   :  { %v507_v56 = vpop.f32.mrf.mxu0  ;;  %v534_v59 = vadd.f32 %v533_v55, %v532_v51 }
  0xec   :  { %v414_v57 = vmax.f32 %v401_v53, 0.0  ;;  %v356_v58 = vadd.f32 %v506_v54, %v438_v44  ;;  %v535_v60 = vpop.f32.mrf.mxu1 }
  0xed   :  { %v508_v61 = vpop.f32.mrf.mxu0 }
  0xee   :  { %v482_v62 = vpack.c.bf16 %v414_v57, %v414_v57  ;;  %v404_v63 = vadd.f32 %v534_v59, %v356_v58  ;;  %v509_v0 = vadd.f32 %v508_v61, %v507_v56  ;;  %v536_v1 = vpop.f32.mrf.mxu1 }
  0xef   :  { %v510_v2 = vpop.f32.mrf.mxu0  ;;  %v537_v5 = vadd.f32 %v536_v1, %v535_v60 }
  0xf0   :  { %431 = vst.msk [vmem:[%s735_s3] sm:$0xf] %vm430_vm0, %v482_v62  ;;  %v415_v3 = vmax.f32 %v404_v63, 0.0  ;;  %v361_v4 = vadd.f32 %v509_v0, %v438_v44  ;;  %v538_v6 = vpop.f32.mrf.mxu1 }
  0xf1   :  { %v511_v7 = vpop.f32.mrf.mxu0 }
  0xf2   :  { %v483_v8 = vpack.c.bf16 %v415_v3, %v415_v3  ;;  %v409_v9 = vadd.f32 %v537_v5, %v361_v4  ;;  %v539_v10 = vpop.f32.mrf.mxu1 }
  0xf4   :  { %432 = vst.msk [vmem:[%s735_s3 + $0x4] sm:$0xf] %vm430_vm0, %v483_v8  ;;  %v416_v11 = vmax.f32 %v409_v9, 0.0 }
  0xf6   :  { %v484_v12 = vpack.c.bf16 %v416_v11, %v416_v11 }
  0xf8   :  { %433 = vst.msk [vmem:[%s735_s3 + $0x8] sm:$0xf] %vm430_vm0, %v484_v12 }

// kernel: neural_network_with_cnn_forward.6
= control target key start
LH: loop header
LB: loop body
LE: loop exit
PB: predicated region body
PF: predicated region fallthrough
CT: control target
= control target key end

     0   :  { %v109_v31 = vlaneseq  ;;  %v725_v32 = vmov 0.0   ;;  %v726_v33 = vmov 1966171168   ;;  %vm727_vm0 = vmmov 0   ;;  %s874_s0 = inlined_call_operand.vmem [shape: bf16[2,576], index: 0, kind: input, shape index: {}]   ;;  %s875_s1 = inlined_call_operand.vmem [shape: bf16[576,64], index: 1, kind: input, shape index: {}]   ;;  %s876_s2 = inlined_call_operand.vmem [shape: f32[1,64], index: 2, kind: input, shape index: {}]   ;;  %s877_s3 = inlined_call_operand.vmem [shape: bf16[2,64], index: 3, kind: output, shape index: {}]  }
   0x1   :  { %v683_v0 = vld [vmem:[%s875_s1 + $0x78] sm:$0xff]   ;;  %v687_v4 = vld [vmem:[%s875_s1 + $0x70] sm:$0xff]   ;;  %v691_v8 = vld [vmem:[%s875_s1 + $0x68] sm:$0xff]   ;;  %v107_v34 = vunpack.c.l.s4 %v726_v33  ;;  %vm380_vm1 = vcmask 523264   ;;  %vm535_vm2 = vcmask 516096  }
   0x2   :  { %v684_v1 = vld [vmem:[%s875_s1 + $0x38] sm:$0xff]   ;;  %619 = vmatprep.subr.bf16.mxu0 %v683_v0  ;;  %v688_v5 = vld [vmem:[%s875_s1 + $0x30] sm:$0xff]   ;;  %v692_v9 = vld [vmem:[%s875_s1 + $0x28] sm:$0xff]   ;;  %v110_v35 = vshrl.u32 %v109_v31, 7 }
   0x3   :  { %v685_v2 = vld [vmem:[%s875_s1 + $0xf8] sm:$0xff]   ;;  %620 = vmatpush3.bf16.msra.mxu0 %v684_v1  ;;  %v689_v6 = vld [vmem:[%s875_s1 + $0xf0] sm:$0xff]   ;;  %v693_v10 = vld [vmem:[%s875_s1 + $0xe8] sm:$0xff]   ;;  %v108_v39 = vunpack.c.0.s8 %v107_v34 }
   0x4   :  { %v686_v3 = vld [vmem:[%s875_s1 + $0xb8] sm:$0xff]   ;;  %641 = vmatprep.subr.bf16.mxu1 %v685_v2  ;;  %621 = vmatprep.subr.bf16.mxu0 %v687_v4  ;;  %v690_v7 = vld [vmem:[%s875_s1 + $0xb0] sm:$0xff]   ;;  %v694_v11 = vld [vmem:[%s875_s1 + $0xa8] sm:$0xff]  }
   0x5   :  { %642 = vmatpush3.bf16.msra.mxu1 %v686_v3  ;;  %v695_v12 = vld [vmem:[%s875_s1 + $0x60] sm:$0xff]   ;;  %v699_v16 = vld [vmem:[%s875_s1 + $0x58] sm:$0xff]   ;;  %v703_v20 = vld [vmem:[%s875_s1 + $0x50] sm:$0xff]   ;;  %v111_v40 = vsub.s32 %v108_v39, %v110_v35 }
   0x6   :  { %643 = vmatprep.subr.bf16.mxu1 %v689_v6  ;;  %v696_v13 = vld [vmem:[%s875_s1 + $0x20] sm:$0xff]   ;;  %v700_v17 = vld [vmem:[%s875_s1 + $0x18] sm:$0xff]   ;;  %v704_v21 = vld [vmem:[%s875_s1 + $0x10] sm:$0xff]  }
   0x7   :  { %622 = vmatpush3.bf16.msra.mxu0 %v688_v5  ;;  %v697_v14 = vld [vmem:[%s875_s1 + $0xe0] sm:$0xff]   ;;  %v701_v18 = vld [vmem:[%s875_s1 + $0xd8] sm:$0xff]   ;;  %v705_v22 = vld [vmem:[%s875_s1 + $0xd0] sm:$0xff]  }
   0x8   :  { %623 = vmatprep.subr.bf16.mxu0 %v691_v8  ;;  %v698_v15 = vld [vmem:[%s875_s1 + $0xa0] sm:$0xff]   ;;  %v702_v19 = vld [vmem:[%s875_s1 + $0x98] sm:$0xff]   ;;  %v706_v23 = vld [vmem:[%s875_s1 + $0x90] sm:$0xff]  }
   0x9   :  { %644 = vmatpush3.bf16.msra.mxu1 %v690_v7  ;;  %v707_v24 = vld [vmem:[%s875_s1 + $0x48] sm:$0xff]   ;;  %v711_v28 = vld [vmem:[%s875_s1 + $0x40] sm:$0xff]   ;;  %v721_v47 = vld [vmem:[%s875_s1 + $0x118] sm:$0xff]  }
   0xa   :  { %645 = vmatprep.subr.bf16.mxu1 %v693_v10  ;;  %v708_v25 = vld [vmem:[%s875_s1 + $0x8] sm:$0xff]   ;;  %v712_v29 = vld [vmem:[%s875_s1] sm:$0xff]   ;;  %v722_v52 = vld [vmem:[%s875_s1 + $0x110] sm:$0xff]  }
   0xb   :  { %624 = vmatpush3.bf16.msra.mxu0 %v692_v9  ;;  %v709_v26 = vld [vmem:[%s875_s1 + $0xc8] sm:$0xff]   ;;  %v713_v30 = vld [vmem:[%s875_s1 + $0xc0] sm:$0xff]  }
   0xc   :  { %625 = vmatprep.subr.bf16.mxu0 %v695_v12  ;;  %v710_v27 = vld [vmem:[%s875_s1 + $0x88] sm:$0xff]   ;;  %v720_v36 = vld [vmem:[%s875_s1 + $0x80] sm:$0xff]  }
   0xd   :  { %646 = vmatpush3.bf16.msra.mxu1 %v694_v11  ;;  %v714_v37 = vld [vmem:[%s874_s0] ss:$5 sps:$4 sm:$0xff]   ;;  %v717_v38 = vld [vmem:[%s874_s0 + $0xa] ss:$5 sps:$4 sm:$0xff]  }
   0xe   :  { %647 = vmatprep.subr.bf16.mxu1 %v697_v14  ;;  %v112_v41 = vrot.slane %v714_v37, %v111_v40  ;;  %v126_v42 = vrot.slane %v717_v38, %v111_v40  ;;  %v716_v50 = vld [vmem:[%s874_s0 + $0x4] ss:$5 sps:$4 sm:$0x11]   ;;  %v719_v51 = vld [vmem:[%s874_s0 + $0xe] ss:$5 sps:$4 sm:$0x11]  }
   0xf   :  { %626 = vmatpush3.bf16.msra.mxu0 %v696_v13  ;;  %v119_v53 = vrot.slane %v716_v50, %v111_v40  ;;  %v133_v54 = vrot.slane %v719_v51, %v111_v40  ;;  %v723_v55 = vld [vmem:[%s875_s1 + $0x108] sm:$0xff]   ;;  %v724_v57 = vld [vmem:[%s875_s1 + $0x100] sm:$0xff]  }
  0x10   :  { %627 = vmatprep.subr.bf16.mxu0 %v699_v16  ;;  %v135_v43 = vcombine.high %v112_v41, %v126_v42  ;;  %v134_v44 = vcombine.low %v112_v41, %v126_v42  ;;  %v581_v3 = vld [vmem:[%s876_s2] ss:$0 sm:$0xff] }
  0x11   :  { %648 = vmatpush3.bf16.msra.mxu1 %v698_v15  ;;  %v136_v56 = vcombine.low %v119_v53, %v133_v54 }
  0x12   :  { %649 = vmatprep.subr.bf16.mxu1 %v701_v18  ;;  %v157_v45 = vrot.slane %v135_v43, %v111_v40  ;;  %v143_v46 = vrot.slane %v134_v44, %v111_v40 }
  0x13   :  { %628 = vmatpush3.bf16.msra.mxu0 %v700_v17  ;;  %v150_v58 = vrot.slane %v136_v56, %v111_v40 }
  0x14   :  { %629 = vmatprep.subr.bf16.mxu0 %v703_v20  ;;  %416 = vmatprep.mubr.bf16.mxu0 %v157_v45  ;;  %v159_v48 = vcombine.high %v157_v45, %v157_v45  ;;  %v158_v49 = vcombine.high %v143_v46, %v143_v46 }
  0x15   :  { %650 = vmatpush3.bf16.msra.mxu1 %v702_v19 }
  0x16   :  { %651 = vmatprep.subr.bf16.mxu1 %v705_v22  ;;  %456 = vmatprep.mubr.bf16.mxu1 %v159_v48 }
  0x17   :  { %630 = vmatpush3.bf16.msra.mxu0 %v704_v21 }
  0x18   :  { %631 = vmatprep.subr.bf16.mxu0 %v707_v24 }
  0x19   :  { %652 = vmatpush3.bf16.msra.mxu1 %v706_v23 }
  0x1a   :  { %653 = vmatprep.subr.bf16.mxu1 %v709_v26 }
  0x1b   :  { %632 = vmatpush3.bf16.msra.mxu0 %v708_v25 }
  0x1c   :  { %633 = vmatprep.subr.bf16.mxu0 %v711_v28 }
  0x1d   :  { %654 = vmatpush3.bf16.msra.mxu1 %v710_v27 }
  0x1e   :  { %655 = vmatprep.subr.bf16.mxu1 %v713_v30 }
  0x1f   :  { %634 = vmatpush3.bf16.msra.mxu0 %v712_v29 }
  0x20   :  { %668 = vmatprep.subr.bf16.mxu0 %v725_v32 }
  0x21   :  { %656 = vmatpush3.bf16.msra.mxu1 %v720_v36 }
  0x22   :  { %417 = vmatmul.mubr.bf16.vlgmr.msra.gmra.mxu0 %v143_v46 }
  0x23   :  { %669 = vmatpush3.bf16.msra.mxu0 %v721_v47  ;;  %676 = vmatprep.mubr.msk.bf16.mxu0 %vm727_vm0, %v725_v32 }
  0x24   :  { %457 = vmatmul.mubr.bf16.vlgmr.msra.gmra.mxu1 %v158_v49  ;;  %670 = vmatprep.subr.bf16.mxu0 %v725_v32 }
  0x27   :  { %671 = vmatpush3.bf16.msra.mxu0 %v722_v52 }
  0x28   :  { %672 = vmatprep.subr.bf16.mxu0 %v725_v32 }
  0x2b   :  { %673 = vmatpush3.bf16.msra.mxu0 %v723_v55 }
  0x2c   :  { %674 = vmatprep.subr.bf16.mxu0 %v725_v32 }
  0x2f   :  { %675 = vmatpush3.bf16.msra.mxu0 %v724_v57 }
  0x32   :  { %677 = vmatmul.mubr.msk.bf16.vlgmr.msra.gmra.mxu0 %vm380_vm1, %v150_v58 }
  0xe2   :  { %v635_v59 = vpop.f32.mrf.mxu0 }
  0xe4   :  { %v636_v60 = vpop.f32.mrf.mxu0  ;;  %v657_v61 = vpop.f32.mrf.mxu1 }
  0xe5   :  { %v637_v2 = vadd.f32 %v636_v60, %v635_v59 }
  0xe6   :  { %v638_v62 = vpop.f32.mrf.mxu0  ;;  %v658_v63 = vpop.f32.mrf.mxu1 }
  0xe7   :  { %v419_v5 = vadd.f32 %v637_v2, %v581_v3  ;;  %v659_v6 = vadd.f32 %v658_v63, %v657_v61 }
  0xe8   :  { %v639_v0 = vpop.f32.mrf.mxu0  ;;  %v660_v1 = vpop.f32.mrf.mxu1 }
  0xe9   :  { %v459_v7 = vadd.f32 %v659_v6, %v419_v5 }
  0xea   :  { %v661_v4 = vpop.f32.mrf.mxu1 }
  0xf2   :  { %v498_v8 = vpop.f32.mrf.mxu0 }
  0xf3   :  { %v499_v9 = vadd.f32 %v498_v8, %v459_v7 }
  0xf4   :  { %v678_v10 = vpop.f32.mrf.mxu0 }
  0xf5   :  { %v504_v11 = vmax.f32 %v499_v9, 0.0 }
  0xf6   :  { %v501_v12 = vpop.f32.mrf.mxu0 }
  0xf7   :  { %v505_v13 = vpack.c.bf16 %v504_v11, %v504_v11 }
  0xf8   :  { %v679_v14 = vpop.f32.mrf.mxu0 }
  0xf9   :  { %v513_v15 = vrot.slane %v505_v13, %v111_v40 }
  0xfb   :  { %v521_v16 = vrot.slane %v513_v15, %v111_v40 }
  0xfd   :  { %536 = vst.msk [vmem:[#allocation2] sm:$0x1] %vm535_vm2, %v521_v16 }
 0x104   :  { %v558_v17 = vld [vmem:[#allocation2] sm:$0x1] }
 0x105   :  { %559 = vst [vmem:[%s877_s3] sm:$0x1] %v558_v17 }

// kernel: neural_network_with_cnn_forward.7
= control target key start
LH: loop header
LB: loop body
LE: loop exit
PB: predicated region body
PF: predicated region fallthrough
CT: control target
= control target key end

     0   :  { %10 = vsyncpa [#allocation3], 0  ;;  %v369_v1 = vmov 0.0   ;;  %v50_v3 = vlaneseq  ;;  %vm370_vm0 = vmmov 0   ;;  %v371_v9 = vmov 1966171168   ;;  %s462_s0 = inlined_call_operand.vmem [shape: bf16[2,64], index: 0, kind: input, shape index: {}]   ;;  %s463_s1 = inlined_call_operand.vmem [shape: bf16[64,128], index: 1, kind: input, shape index: {}]   ;;  %s464_s2 = inlined_call_operand.vmem [shape: f32[1,128], index: 2, kind: input, shape index: {}]   ;;  %s465_s3 = inlined_call_operand.vmem [shape: bf16[128,6], index: 3, kind: input, shape index: {}]   ;;  %s466_s4 = inlined_call_operand.vmem [shape: f32[1,6], index: 4, kind: input, shape index: {}]   ;;  %s467_s5 = inlined_call_operand.hbm [shape: f32[2,6], index: 5, kind: output, shape index: {}]  }
   0x1   :  { %v335_v0 = vld [vmem:[%s463_s1 + $0x18] sm:$0xff]   ;;  %297 = vmatprep.subr.bf16.mxu0 %v369_v1  ;;  %309 = vmatprep.subr.bf16.mxu1 %v369_v1  ;;  %v336_v2 = vld [vmem:[%s463_s1 + $0x10] sm:$0xff]   ;;  %v337_v4 = vld [vmem:[%s463_s1 + $0x8] sm:$0xff]   ;;  %v48_v10 = vunpack.c.l.s4 %v371_v9  ;;  %vm93_vm1 = vcmask 523264   ;;  %vm250_vm2 = vcmask 48128  }
   0x2   :  { %298 = vmatpush3.bf16.msra.mxu0 %v335_v0  ;;  %305 = vmatprep.mubr.msk.bf16.mxu0 %vm370_vm0, %v369_v1  ;;  %v22_v5 = vld [vmem:[%s462_s0] sm:$0x1]  ;;  %v23_v6 = vld [vmem:[%s462_s0 + $0x1] sm:$0x1]  ;;  %v24_v7 = vld [vmem:[%s462_s0 + $0x2] sm:$0x1] }
   0x3   :  { %299 = vmatprep.subr.bf16.mxu0 %v369_v1  ;;  %325 = vmatprep.mubr.msk.bf16.mxu1 %vm370_vm0, %v369_v1  ;;  %v25_v8 = vld [vmem:[%s462_s0 + $0x3] sm:$0x1]  ;;  %v51_v11 = vshrl.u32 %v50_v3, 7  ;;  %v339_v12 = vld [vmem:[%s465_s3 + $0x38] sm:$0xff]   ;;  %v45_v13 = vcombine.low %v22_v5, %v23_v6  ;;  %v49_v15 = vunpack.c.0.s8 %v48_v10  ;;  %v340_v16 = vld [vmem:[%s465_s3 + $0x30] sm:$0xff]  }
   0x4   :  { %v46_v14 = vcombine.low %v24_v7, %v25_v8  ;;  %310 = vmatpush3.bf16.msra.mxu1 %v339_v12  ;;  %v338_v17 = vld [vmem:[%s463_s1] sm:$0xff]   ;;  %v341_v21 = vld [vmem:[%s465_s3 + $0x28] sm:$0xff]   ;;  %v343_v25 = vld [vmem:[%s465_s3 + $0x18] sm:$0xff]  }
   0x5   :  { %311 = vmatprep.subr.bf16.mxu1 %v369_v1  ;;  %v52_v18 = vsub.s32 %v49_v15, %v51_v11  ;;  %v342_v24 = vld [vmem:[%s465_s3 + $0x20] sm:$0xff]   ;;  %v344_v26 = vld [vmem:[%s465_s3 + $0x10] sm:$0xff]   ;;  %v345_v27 = vld [vmem:[%s465_s3 + $0x8] sm:$0xff]  }
   0x6   :  { %300 = vmatpush3.bf16.msra.mxu0 %v336_v2  ;;  %v346_v28 = vld [vmem:[%s465_s3] sm:$0xff]  }
   0x7   :  { %301 = vmatprep.subr.bf16.mxu0 %v369_v1  ;;  %v53_v19 = vrot.slane %v45_v13, %v52_v18  ;;  %v60_v20 = vrot.slane %v46_v14, %v52_v18  ;;  %v268_v29 = vld [vmem:[%s464_s2] ss:$0 sm:$0xff] }
   0x8   :  { %312 = vmatpush3.bf16.msra.mxu1 %v340_v16  ;;  %v274_v37 = vld [vmem:[%s466_s4] ss:$0 sm:$0xff] }
   0x9   :  { %313 = vmatprep.subr.bf16.mxu1 %v369_v1  ;;  %v61_v22 = vcombine.low %v53_v19, %v60_v20 }
   0xa   :  { %302 = vmatpush3.bf16.msra.mxu0 %v337_v4 }
   0xb   :  { %303 = vmatprep.subr.bf16.mxu0 %v369_v1  ;;  %v68_v23 = vrot.slane %v61_v22, %v52_v18 }
   0xc   :  { %314 = vmatpush3.bf16.msra.mxu1 %v341_v21 }
   0xd   :  { %315 = vmatprep.subr.bf16.mxu1 %v369_v1 }
   0xe   :  { %304 = vmatpush3.bf16.msra.mxu0 %v338_v17 }
  0x10   :  { %316 = vmatpush3.bf16.msra.mxu1 %v342_v24 }
  0x11   :  { %306 = vmatmul.mubr.msk.bf16.vlgmr.msra.gmra.mxu0 %vm93_vm1, %v68_v23  ;;  %317 = vmatprep.subr.bf16.mxu1 %v369_v1 }
  0x14   :  { %318 = vmatpush3.bf16.msra.mxu1 %v343_v25 }
  0x15   :  { %319 = vmatprep.subr.bf16.mxu1 %v369_v1 }
  0x18   :  { %320 = vmatpush3.bf16.msra.mxu1 %v344_v26 }
  0x19   :  { %321 = vmatprep.subr.bf16.mxu1 %v369_v1 }
  0x1c   :  { %322 = vmatpush3.bf16.msra.mxu1 %v345_v27 }
  0x1d   :  { %323 = vmatprep.subr.bf16.mxu1 %v369_v1 }
  0x20   :  { %324 = vmatpush3.bf16.msra.mxu1 %v346_v28 }
  0xd1   :  { %v131_v30 = vpop.f32.mrf.mxu0 }
  0xd2   :  { %v132_v31 = vadd.f32 %v268_v29, %v131_v30 }
  0xd3   :  { %v307_v32 = vpop.f32.mrf.mxu0 }
  0xd4   :  { %v137_v33 = vmax.f32 %v132_v31, 0.0 }
  0xd5   :  { %v134_v34 = vpop.f32.mrf.mxu0 }
  0xd6   :  { %v138_v35 = vpack.c.bf16 %v137_v33, %v137_v33 }
  0xd7   :  { %v308_v36 = vpop.f32.mrf.mxu0 }
  0xd8   :  { %326 = vmatmul.mubr.bf16.vlgmr.msra.gmra.mxu1 %v138_v35 }
 0x198   :  { %v244_v38 = vpop.f32.mrf.mxu1 }
 0x199   :  { %v245_v39 = vadd.f32 %v274_v37, %v244_v38 }
 0x19a   :  { %v327_v40 = vpop.f32.mrf.mxu1 }
 0x19b   :  { %251 = vst.msk [vmem:[#allocation2] sm:$0xff] %vm250_vm2, %v245_v39 }
 0x19c   :  { %v247_v41 = vpop.f32.mrf.mxu1 }
 0x19e   :  { %v328_v42 = vpop.f32.mrf.mxu1 }
 0x19f   :  { %256 = vsyncadd [#allocation3], 96  ;;  %s372_s2 = smov [#allocation2]  }
 0x1a0   :  { %s257_s3 = sshll.u32 %s372_s2, 4  ;;  %s258_s3 = int_to_ptr.vmem [resolvable:$true] %s257_s3 }
 0x1a1   :  { %s347_s27 = scalar_lea.vmem %s258_s3, 32  ;;  %s351_s28 = scalar_lea.vmem %s258_s3, 128 }
 0x1a2   :  { %p348_p0 = scmp.ne.s32.totalorder %s258_s3, %s347_s27  ;;  %p352_p1 = scmp.lt.s32.totalorder %s258_s3, %s258_s3 }
 0x1a3   :  { %p353_p2 = scmp.lt.s32.totalorder %s351_s28, %s347_s27 }
 0x1a5   :  { %p354_p3 = por %p353_p2, %p352_p1 }
 0x1a7   :  { %p355_p4 = pnand %p354_p3, %p348_p0 }
 0x1a9   :  { %358 = shalt.err (!%p355_p4)
}
 0x1aa   :  { %s373_s4 = smov 32   ;;  %s374_s29 = smov 2  }
 0x1ab   :  { %263 = dma.vmem_to_hbm [thread:$0]  %s258_s3, 32, %s467_s5, [#allocation3], %s373_s4, %s373_s4, %s374_s29  }
 0x1ac   :  { %367 = dma.done.wait [#allocation3], 128  }
 0x1ad   :  { %368 = vsyncadd [#allocation3], 4294967168 }
 0x1ae   :  { %267 = vsyncpa [#allocation3], 1 }

</bundles_post_ra>
